<compile_context>
chip_gen: v7x
topology: tpu7x:2x2x1
jax: 0.10.0
libtpu: 0.0.40
codegen_flags: <defaults>
</compile_context>

<pallas_src>
from functools import partial

import jax
import jax.numpy as jnp
import numpy as np
from jax.experimental import pallas as pl
from jax.experimental.pallas import tpu as pltpu

LANE = 128          # feature dims padded to a multiple of this (lane-dense)
BATCH_BLOCK = 128   # rows per grid step (>= 128 for MXU utilization)
PAD_LOGSTD = -1e4   # softplus(-1e4) == 0.0 exactly in f32 -> pad lanes stay 0


def _round_up(n, m):
    return ((n + m - 1) // m) * m


def softplus(x):
    return jnp.logaddexp(x, 0.0)


# ----------------------------------------------------------------------------
# Pallas kernel: fused MLP for one (sample, batch-block) grid point.
#   x_ref: (TB, P)     bf16 padded activations
#   w_ref: (L, P, P)   bf16 padded weights, (in_dim, out_dim) layout
#   b_ref: (L, 1, P)   f32 padded biases
#   o_ref: (TB, P)     f32 padded output
# All intermediate activations stay in vregs/VMEM; matmuls on the MXU in bf16
# with f32 accumulation; bias-add / ReLU in f32.
# ----------------------------------------------------------------------------
def fused_mlp_kernel(x_ref, w_ref, b_ref, o_ref, *, num_linear: int):
    h = x_ref[...]                                   # bf16
    for l in range(num_linear):                      # static unrolled loop
        acc = jnp.dot(h, w_ref[l], preferred_element_type=jnp.float32)
        acc = acc + b_ref[l]                         # f32 bias (1, P) broadcast
        if l < num_linear - 1:
            acc = jnp.maximum(acc, 0.0)              # f32 ReLU
            h = acc.astype(jnp.bfloat16)             # cast only for next MXU push
        else:
            h = acc
    o_ref[...] = h.astype(o_ref.dtype)


def fused_mlp(x_pad, w_stack, b_stack, batch_block):
    """One pallas_call for all samples x all batch blocks."""
    Bp, P = x_pad.shape
    S, L = w_stack.shape[:2]
    nb = Bp // batch_block
    return pl.pallas_call(
        partial(fused_mlp_kernel, num_linear=L),
        out_shape=jax.ShapeDtypeStruct((S, Bp, P), jnp.float32),
        grid_spec=pltpu.PrefetchScalarGridSpec(
            num_scalar_prefetch=0,
            grid=(S, nb),                             # batch innermost -> weights stay resident per sample
            in_specs=[
                pl.BlockSpec((batch_block, P), lambda s, b: (b, 0)),
                pl.BlockSpec((None, L, P, P), lambda s, b: (s, 0, 0, 0)),
                pl.BlockSpec((None, L, 1, P), lambda s, b: (s, 0, 0, 0)),
            ],
            out_specs=pl.BlockSpec((None, batch_block, P), lambda s, b: (s, b, 0)),
        ),
        compiler_params=pltpu.CompilerParams(
            dimension_semantics=("parallel", "parallel")),
    )(x_pad, w_stack, b_stack)


# ----------------------------------------------------------------------------
# Parameter init: pack mu/logstd ONCE into padded, (in,out)-transposed stacks.
# ----------------------------------------------------------------------------
def init_packed_params(key, input_dim, output_dim, hidden_dim, num_layers):
    layer_dims = [input_dim] + [hidden_dim] * num_layers + [output_dim]
    L = len(layer_dims) - 1
    P = _round_up(max(layer_dims), LANE)

    w_mu = jnp.zeros((L, P, P), jnp.float32)
    w_logstd = jnp.full((L, P, P), PAD_LOGSTD, jnp.float32)
    b_mu = jnp.zeros((L, 1, P), jnp.float32)
    b_logstd = jnp.full((L, 1, P), PAD_LOGSTD, jnp.float32)

    for i in range(L):
        in_d, out_d = layer_dims[i], layer_dims[i + 1]
        key, wk = jax.random.split(key)
        w = jax.random.normal(wk, (out_d, in_d), jnp.float32) * 0.01
        w_mu = w_mu.at[i, :in_d, :out_d].set(w.T)          # (in, out) layout
        w_logstd = w_logstd.at[i, :in_d, :out_d].set(-5.0)
        b_logstd = b_logstd.at[i, 0, :out_d].set(-5.0)
        # b_mu stays zero (torch.zeros)

    packed = dict(w_mu=w_mu, w_logstd=w_logstd, b_mu=b_mu, b_logstd=b_logstd)
    log_noise = jnp.float32(-3.0)   # present in the module, unused in forward()
    return packed, tuple(layer_dims), log_noise


def sample_packed(key, packed, num_samples):
    """Reparameterized sample on the packed layout: w = mu + softplus(logstd)*eps."""
    kw, kb = jax.random.split(key)
    eps_w = jax.random.normal(kw, (num_samples,) + packed["w_mu"].shape, jnp.float32)
    eps_b = jax.random.normal(kb, (num_samples,) + packed["b_mu"].shape, jnp.float32)
    w = packed["w_mu"][None] + softplus(packed["w_logstd"])[None] * eps_w
    b = packed["b_mu"][None] + softplus(packed["b_logstd"])[None] * eps_b
    return w, b   # f32 (S, L, P, P), (S, L, 1, P); pad lanes exactly zero


# ----------------------------------------------------------------------------
# Forward (one jit covers sampling glue + pallas kernel + final slice)
# ----------------------------------------------------------------------------
@partial(jax.jit, static_argnames=("out_dim", "sample", "num_samples", "batch_block"))
def bayesian_mlp_forward(x, packed, key, *, out_dim, sample=True, num_samples=1,
                         batch_block=BATCH_BLOCK):
    if sample:
        w_f32, b_f32 = sample_packed(key, packed, num_samples)
    else:
        w_f32 = packed["w_mu"][None]
        b_f32 = packed["b_mu"][None]

    S, L, P, _ = w_f32.shape
    w_bf16 = w_f32.astype(jnp.bfloat16)       # MXU inputs in bf16
    # biases stay f32 (bias-add done in f32 inside the kernel)

    batch, in_dim = x.shape
    assert batch_block % 8 == 0
    bpad = _round_up(batch, batch_block)
    x_pad = jnp.zeros((bpad, P), jnp.bfloat16).at[:batch, :in_dim].set(
        x.astype(jnp.bfloat16))

    y_pad = fused_mlp(x_pad, w_bf16, b_f32, batch_block)   # (S, bpad, P) f32
    return y_pad[:, :batch, :out_dim]                      # (S, batch, out_dim)


# ----------------------------------------------------------------------------
# Plain-JAX reference (f32, module semantics) operating on the packed stacks
# ----------------------------------------------------------------------------
def ref_forward_from_stacks(x, w_stack, b_stack, layer_dims):
    L = len(layer_dims) - 1
    outs = []
    for s in range(w_stack.shape[0]):
        h = x
        for l in range(L):
            in_d, out_d = layer_dims[l], layer_dims[l + 1]
            w = w_stack[s, l, :in_d, :out_d]            # (in, out) layout
            b = b_stack[s, l, 0, :out_d]
            h = jnp.dot(h, w, precision=jax.lax.Precision.HIGHEST) + b
            if l < L - 1:
                h = jnp.maximum(h, 0.0)
        outs.append(h)
    return jnp.stack(outs, 0)


# ----------------------------------------------------------------------------
# Main
# ----------------------------------------------------------------------------
if __name__ == "__main__":
    input_dim, output_dim, hidden_dim, num_layers = 16, 8, 32, 2
    batch = 256          # 2 batch blocks of 128 rows -> exercises the batch grid
    num_samples = 2      # Monte-Carlo samples -> exercises the sample grid axis

    root_key = jax.random.PRNGKey(0)
    pkey, skey, xkey = jax.random.split(root_key, 3)

    packed, layer_dims, log_noise = init_packed_params(
        pkey, input_dim, output_dim, hidden_dim, num_layers)
    x = jax.random.normal(xkey, (batch, input_dim), jnp.float32)

    # Sampled forward (sample=True path of the PyTorch module), S samples fused.
    y_sampled = bayesian_mlp_forward(x, packed, skey, out_dim=output_dim,
                                     sample=True, num_samples=num_samples)
    y_sampled = jax.block_until_ready(y_sampled)           # (S, batch, out_dim)

    # Deterministic (mean-weight) forward.
    y_mean = bayesian_mlp_forward(x, packed, skey, out_dim=output_dim,
                                  sample=False)
    y_mean = jax.block_until_ready(y_mean)                 # (1, batch, out_dim)

    # References in f32 (same key => same eps => same sampled weights).
    w_s, b_s = sample_packed(skey, packed, num_samples)
    y_sampled_ref = ref_forward_from_stacks(x, w_s, b_s, layer_dims)
    y_mean_ref = ref_forward_from_stacks(
        x, packed["w_mu"][None], packed["b_mu"][None], layer_dims)

    assert y_sampled.shape == (num_samples, batch, output_dim)
    assert y_mean.shape == (1, batch, output_dim)
    # Tolerances account for bf16 MXU inputs (f32 accumulation, f32 bias/ReLU).
    np.testing.assert_allclose(np.asarray(y_sampled), np.asarray(y_sampled_ref),
                               rtol=5e-2, atol=2e-5)
    np.testing.assert_allclose(np.asarray(y_mean), np.asarray(y_mean_ref),
                               rtol=5e-2, atol=2e-5)

    print("KERNEL_OK")
</pallas_src>

<mosaic_0001>
module attributes {stable_mosaic.version = 11 : i64} {
  func.func @fused_mlp_kernel(%arg0: i32, %arg1: i32, %arg2: memref<128x128xbf16, #tpu.memory_space<vmem>>, %arg3: memref<1x3x128x128xbf16, #tpu.memory_space<vmem>>, %arg4: memref<1x3x1x128xf32, #tpu.memory_space<vmem>>, %arg5: memref<1x128x128xf32, #tpu.memory_space<vmem>>) attributes {dimension_semantics = [#tpu.dimension_semantics<parallel>, #tpu.dimension_semantics<parallel>], iteration_bounds = array<i64: 2, 2>, scalar_prefetch = 0 : i64, scratch_operands = 0 : i64, tpu.core_type = #tpu.core_type<tc>, window_params = [{transform_indices = @transform_0, window_bounds = array<i64: 128, 128>}, {transform_indices = @transform_1, window_bounds = array<i64: 1, 3, 128, 128>}, {transform_indices = @transform_2, window_bounds = array<i64: 1, 3, 1, 128>}, {transform_indices = @transform_3, window_bounds = array<i64: 1, 128, 128>}]} {
    %c0 = arith.constant 0 : index
    %c0_0 = arith.constant 0 : index
    %0 = vector.load %arg2[%c0, %c0_0] : memref<128x128xbf16, #tpu.memory_space<vmem>>, vector<128x128xbf16>
    %c0_1 = arith.constant 0 : index
    %c0_2 = arith.constant 0 : index
    %c0_3 = arith.constant 0 : index
    %c0_4 = arith.constant 0 : index
    %1 = vector.load %arg3[%c0_1, %c0_2, %c0_3, %c0_4] : memref<1x3x128x128xbf16, #tpu.memory_space<vmem>>, vector<1x1x128x128xbf16>
    %2 = vector.shape_cast %1 : vector<1x1x128x128xbf16> to vector<128x128xbf16>
    %cst = arith.constant dense<0.000000e+00> : vector<128x128xf32>
    %3 = tpu.matmul %0, %2, %cst {dimension_numbers = #tpu.dot_dimension_numbers<[1], [0], [0], [1], [0, 0, 1, 1], [], []>} : vector<128x128xbf16>, vector<128x128xbf16>, vector<128x128xf32> -> vector<128x128xf32>
    %c0_5 = arith.constant 0 : index
    %c0_6 = arith.constant 0 : index
    %c0_7 = arith.constant 0 : index
    %c0_8 = arith.constant 0 : index
    %4 = vector.load %arg4[%c0_5, %c0_6, %c0_7, %c0_8] : memref<1x3x1x128xf32, #tpu.memory_space<vmem>>, vector<1x1x1x128xf32>
    %5 = vector.shape_cast %4 : vector<1x1x1x128xf32> to vector<1x128xf32>
    %6 = vector.broadcast %5 : vector<1x128xf32> to vector<128x128xf32>
    %7 = arith.addf %3, %6 : vector<128x128xf32>
    %cst_9 = arith.constant 0.000000e+00 : f32
    %8 = vector.broadcast %cst_9 : f32 to vector<128x128xf32>
    %9 = arith.maximumf %7, %8 : vector<128x128xf32>
    %10 = arith.truncf %9 : vector<128x128xf32> to vector<128x128xbf16>
    %c0_10 = arith.constant 0 : index
    %c1 = arith.constant 1 : index
    %c0_11 = arith.constant 0 : index
    %c0_12 = arith.constant 0 : index
    %11 = vector.load %arg3[%c0_10, %c1, %c0_11, %c0_12] : memref<1x3x128x128xbf16, #tpu.memory_space<vmem>>, vector<1x1x128x128xbf16>
    %12 = vector.shape_cast %11 : vector<1x1x128x128xbf16> to vector<128x128xbf16>
    %cst_13 = arith.constant dense<0.000000e+00> : vector<128x128xf32>
    %13 = tpu.matmul %10, %12, %cst_13 {dimension_numbers = #tpu.dot_dimension_numbers<[1], [0], [0], [1], [0, 0, 1, 1], [], []>} : vector<128x128xbf16>, vector<128x128xbf16>, vector<128x128xf32> -> vector<128x128xf32>
    %c0_14 = arith.constant 0 : index
    %c1_15 = arith.constant 1 : index
    %c0_16 = arith.constant 0 : index
    %c0_17 = arith.constant 0 : index
    %14 = vector.load %arg4[%c0_14, %c1_15, %c0_16, %c0_17] : memref<1x3x1x128xf32, #tpu.memory_space<vmem>>, vector<1x1x1x128xf32>
    %15 = vector.shape_cast %14 : vector<1x1x1x128xf32> to vector<1x128xf32>
    %16 = vector.broadcast %15 : vector<1x128xf32> to vector<128x128xf32>
    %17 = arith.addf %13, %16 : vector<128x128xf32>
    %cst_18 = arith.constant 0.000000e+00 : f32
    %18 = vector.broadcast %cst_18 : f32 to vector<128x128xf32>
    %19 = arith.maximumf %17, %18 : vector<128x128xf32>
    %20 = arith.truncf %19 : vector<128x128xf32> to vector<128x128xbf16>
    %c0_19 = arith.constant 0 : index
    %c2 = arith.constant 2 : index
    %c0_20 = arith.constant 0 : index
    %c0_21 = arith.constant 0 : index
    %21 = vector.load %arg3[%c0_19, %c2, %c0_20, %c0_21] : memref<1x3x128x128xbf16, #tpu.memory_space<vmem>>, vector<1x1x128x128xbf16>
    %22 = vector.shape_cast %21 : vector<1x1x128x128xbf16> to vector<128x128xbf16>
    %cst_22 = arith.constant dense<0.000000e+00> : vector<128x128xf32>
    %23 = tpu.matmul %20, %22, %cst_22 {dimension_numbers = #tpu.dot_dimension_numbers<[1], [0], [0], [1], [0, 0, 1, 1], [], []>} : vector<128x128xbf16>, vector<128x128xbf16>, vector<128x128xf32> -> vector<128x128xf32>
    %c0_23 = arith.constant 0 : index
    %c2_24 = arith.constant 2 : index
    %c0_25 = arith.constant 0 : index
    %c0_26 = arith.constant 0 : index
    %24 = vector.load %arg4[%c0_23, %c2_24, %c0_25, %c0_26] : memref<1x3x1x128xf32, #tpu.memory_space<vmem>>, vector<1x1x1x128xf32>
    %25 = vector.shape_cast %24 : vector<1x1x1x128xf32> to vector<1x128xf32>
    %26 = vector.broadcast %25 : vector<1x128xf32> to vector<128x128xf32>
    %27 = arith.addf %23, %26 : vector<128x128xf32>
    %c0_27 = arith.constant 0 : index
    %c0_28 = arith.constant 0 : index
    %c0_29 = arith.constant 0 : index
    %28 = vector.load %arg5[%c0_27, %c0_28, %c0_29] : memref<1x128x128xf32, #tpu.memory_space<vmem>>, vector<1x128x128xf32>
    %29 = vector.shape_cast %28 : vector<1x128x128xf32> to vector<128x128xf32>
    %30 = vector.shape_cast %27 : vector<128x128xf32> to vector<1x128x128xf32>
    tpu.vector_store %arg5[%c0_27, %c0_28, %c0_29], %30 {strides = array<i32>} : memref<1x128x128xf32, #tpu.memory_space<vmem>>, vector<1x128x128xf32>,
    return
  }
  func.func @transform_0(%arg0: i32, %arg1: i32) -> (i32, i32) {
    %c0_i32 = arith.constant 0 : i32
    %c0_i32_0 = arith.constant 0 : i32
    return %arg1, %c0_i32 : i32, i32
  }
  func.func @transform_1(%arg0: i32, %arg1: i32) -> (i32, i32, i32, i32) {
    %c0_i32 = arith.constant 0 : i32
    %c0_i32_0 = arith.constant 0 : i32
    %c0_i32_1 = arith.constant 0 : i32
    %c0_i32_2 = arith.constant 0 : i32
    return %arg0, %c0_i32, %c0_i32_0, %c0_i32_1 : i32, i32, i32, i32
  }
  func.func @transform_2(%arg0: i32, %arg1: i32) -> (i32, i32, i32, i32) {
    %c0_i32 = arith.constant 0 : i32
    %c0_i32_0 = arith.constant 0 : i32
    %c0_i32_1 = arith.constant 0 : i32
    %c0_i32_2 = arith.constant 0 : i32
    return %arg0, %c0_i32, %c0_i32_0, %c0_i32_1 : i32, i32, i32, i32
  }
  func.func @transform_3(%arg0: i32, %arg1: i32) -> (i32, i32, i32) {
    %c0_i32 = arith.constant 0 : i32
    %c0_i32_0 = arith.constant 0 : i32
    return %arg0, %arg1, %c0_i32 : i32, i32, i32
  }
}

</mosaic_0001>

<bundles_post_ra>
// kernel: bayesian_mlp_forward.1
= control target key start
LH: loop header
LB: loop body
LE: loop exit
PB: predicated region body
PF: predicated region fallthrough
CT: control target
= control target key end

     0   :  { %s1354_s12 = smov 0   ;;  %s1356_s13 = smov 0   ;;  %s1515_s0 = inlined_call_operand.vmem [shape: bf16[256,128], index: 0, kind: input, shape index: {}]   ;;  %s1516_s1 = inlined_call_operand.vmem [shape: bf16[2,3,128,128], index: 1, kind: input, shape index: {}]   ;;  %s1517_s2 = inlined_call_operand.vmem [shape: f32[2,3,1,128], index: 2, kind: input, shape index: {}]   ;;  %s1518_s3 = inlined_call_operand.vmem [shape: f32[2,256,128], index: 3, kind: output, shape index: {}]  }
   0x1   :  { %s1358_s14 = smov 0   ;;  %s1360_s15 = smov 0  }
   0x2   :  { %s1362_s16 = smov 0  }
   0x3 LB: > { %s22_s17 = sadd.s32 1, %s1324_s14  ;;  %s25_s18 = sadd.s32 1, %s1328_s15  ;;  %s1332_s16 = sphi %s1362_s16, %s13_s16   ;;  %s1328_s15 = sphi %s1360_s15, %s1522_s15   ;;  %s1324_s14 = sphi %s1358_s14, %s1521_s14   ;;  %s1320_s13 = sphi %s1356_s13, %s1520_s13   ;;  %s1316_s12 = sphi %s1354_s12, %s1519_s12  }
   0x4   : > { %p23_p0 = scmp.ge.s32.totalorder %s22_s17, 2  ;;  %p982_p1 = scmp.ge.s32.totalorder %s1332_s16, 1 }
   0x5   : > { %p171_p2 = scmp.lt.s32.totalorder %s1332_s16, 5 }
   0x6   : > { %s1524_s17 = smov (%p23_p0, %s22_s17), 0  ;;  %s1526_s18 = smov (!%p23_p0, %s25_s18), %s1328_s15 }
   0x7   : > { %p172_p3 = pnand %p982_p1, %p171_p2  ;;  %p27_p4 = scmp.ge.s32.totalorder %s1526_s18, 2 }
   0x8   : > { %p214_p5 = scmp.lt.s32.totalorder (!%p172_p3), %s1320_s13, 1  ;;  %s983_s19 = sshll.u32 (!%p172_p3), %s1316_s12, 4 }
   0x9   : > { %s1528_s18 = smov (%p27_p4, %s1526_s18), 0  ;;  %175 = sbr.rel (%p172_p3) target bundleno = 739 (0x2e3), region = 32 }
   0xa   : > { %p209_p6 = scmp.lt.s32.totalorder (!%p172_p3), %s983_s19, 31 }
  0x10   : > { %s1530_s13 = smov (!%p214_p5, %s1320_s13), 1  ;;  %s1532_s19 = smov (!%p209_p6, %s983_s19), 31 }
  0x11   : > { %s1220_s20 = smul.u32 192, %s1530_s13  ;;  %s984_s24 = sshll.u32 %s1532_s19, 2 }
  0x12   : > { %s1401_s27 = scalar_lea.vmem %s1515_s0, %s984_s24  ;;  %s1221_s28 = smul.u32 3, %s1530_s13 }
  0x13   : > { %s1392_s23 = scalar_lea.vmem %s1516_s1, %s1220_s20  ;;  %v1270_v4 = vld [vmem:[%s1401_s27] sm:$0xff]   ;;  %v1271_v14 = vld [vmem:[%s1401_s27 + $0x8] sm:$0xff]   ;;  %v1272_v15 = vld [vmem:[%s1401_s27 + $0x10] sm:$0xff]   ;;  %s987_s5 = sshll.u32 %s1530_s13, 5 }
  0x14   : > { %v1262_v0 = vld [vmem:[%s1392_s23] sm:$0xff]   ;;  %v1263_v1 = vld [vmem:[%s1392_s23 + $0x8] sm:$0xff]   ;;  %v1264_v2 = vld [vmem:[%s1392_s23 + $0x10] sm:$0xff]   ;;  %1124 = vmatprep.mubr.bf16.mxu0 %v1270_v4  ;;  %s1446_s4 = scalar_lea.vmem %s1517_s2, %s1221_s28  ;;  %s229_s6 = sadd.s32 %s987_s5, %s1532_s19 }
  0x15   : > { %1108 = vmatprep.subr.bf16.mxu0 %v1262_v0  ;;  %v1265_v3 = vld [vmem:[%s1392_s23 + $0x18] sm:$0xff]   ;;  %v1266_v5 = vld [vmem:[%s1392_s23 + $0x20] sm:$0xff]   ;;  %v1267_v6 = vld [vmem:[%s1392_s23 + $0x28] sm:$0xff]   ;;  %s988_s7 = sshll.u32 %s229_s6, 3 }
  0x16   : > { %1109 = vmatpush3.bf16.msra.mxu0 %v1262_v0  ;;  %v1278_v7 = vld [vmem:[%s1392_s23 + $0x40] sm:$0xff]   ;;  %v1279_v8 = vld [vmem:[%s1392_s23 + $0x48] sm:$0xff]   ;;  %v1268_v9 = vld [vmem:[%s1392_s23 + $0x30] sm:$0xff]   ;;  %s1482_s10 = scalar_lea.vmem %s1518_s3, %s988_s7 }
  0x17   : > { %1110 = vmatprep.subr.bf16.mxu0 %v1263_v1  ;;  %1140 = vmatprep.subr.bf16.mxu1 %v1278_v7  ;;  %v1280_v10 = vld [vmem:[%s1392_s23 + $0x50] sm:$0xff]   ;;  %v1269_v11 = vld [vmem:[%s1392_s23 + $0x38] sm:$0xff]   ;;  %v1282_v13 = vld [vmem:[%s1392_s23 + $0x60] sm:$0xff]  }
  0x18   : > { %1141 = vmatpush3.bf16.msra.mxu1 %v1278_v7  ;;  %v1281_v12 = vld [vmem:[%s1392_s23 + $0x58] sm:$0xff]   ;;  %v1283_v16 = vld [vmem:[%s1392_s23 + $0x68] sm:$0xff]   ;;  %v1274_v18 = vld [vmem:[%s1401_s27 + $0x20] sm:$0xff]  }
  0x19   : > { %1142 = vmatprep.subr.bf16.mxu1 %v1279_v8  ;;  %v1273_v17 = vld [vmem:[%s1401_s27 + $0x18] sm:$0xff]   ;;  %v1275_v19 = vld [vmem:[%s1401_s27 + $0x28] sm:$0xff]   ;;  %v1276_v20 = vld [vmem:[%s1401_s27 + $0x30] sm:$0xff]  }
  0x1a   : > { %1111 = vmatpush3.bf16.msra.mxu0 %v1263_v1  ;;  %v1277_v21 = vld [vmem:[%s1401_s27 + $0x38] sm:$0xff]   ;;  %v1284_v22 = vld [vmem:[%s1392_s23 + $0x70] sm:$0xff]   ;;  %v1286_v24 = vld [vmem:[%s1392_s23 + $0x80] sm:$0xff]  }
  0x1b   : > { %1112 = vmatprep.subr.bf16.mxu0 %v1264_v2  ;;  %v1285_v23 = vld [vmem:[%s1392_s23 + $0x78] sm:$0xff]   ;;  %v1287_v25 = vld [vmem:[%s1392_s23 + $0x88] sm:$0xff]   ;;  %v1288_v26 = vld [vmem:[%s1392_s23 + $0x90] sm:$0xff]  }
  0x1c   : > { %1143 = vmatpush3.bf16.msra.mxu1 %v1279_v8  ;;  %v1428_v27 = vld [vmem:[%s1392_s23 + $0x98] sm:$0xff]   ;;  %v1432_v28 = vld [vmem:[%s1392_s23 + $0xa0] sm:$0xff]   ;;  %v1437_v29 = vld [vmem:[%s1392_s23 + $0xa8] sm:$0xff]  }
  0x1d   : > { %1144 = vmatprep.subr.bf16.mxu1 %v1280_v10  ;;  %v1449_v30 = vld [vmem:[%s1446_s4] ss:$0 sm:$0xff] }
  0x1e   : > { %1113 = vmatpush3.bf16.msra.mxu0 %v1264_v2 }
  0x1f   : > { %1114 = vmatprep.subr.bf16.mxu0 %v1265_v3 }
  0x20   : > { %1145 = vmatpush3.bf16.msra.mxu1 %v1280_v10 }
  0x21   : > { %1146 = vmatprep.subr.bf16.mxu1 %v1281_v12 }
  0x22   : > { %1115 = vmatpush3.bf16.msra.mxu0 %v1265_v3 }
  0x23   : > { %1116 = vmatprep.subr.bf16.mxu0 %v1266_v5 }
  0x24   : > { %1147 = vmatpush3.bf16.msra.mxu1 %v1281_v12 }
  0x25   : > { %1148 = vmatprep.subr.bf16.mxu1 %v1282_v13 }
  0x26   : > { %1117 = vmatpush3.bf16.msra.mxu0 %v1266_v5 }
  0x27   : > { %1118 = vmatprep.subr.bf16.mxu0 %v1267_v6 }
  0x28   : > { %1149 = vmatpush3.bf16.msra.mxu1 %v1282_v13 }
  0x29   : > { %1150 = vmatprep.subr.bf16.mxu1 %v1283_v16 }
  0x2a   : > { %1119 = vmatpush3.bf16.msra.mxu0 %v1267_v6 }
  0x2b   : > { %1120 = vmatprep.subr.bf16.mxu0 %v1268_v9 }
  0x2c   : > { %1151 = vmatpush3.bf16.msra.mxu1 %v1283_v16 }
  0x2d   : > { %1152 = vmatprep.subr.bf16.mxu1 %v1284_v22 }
  0x2e   : > { %1121 = vmatpush3.bf16.msra.mxu0 %v1268_v9 }
  0x2f   : > { %1122 = vmatprep.subr.bf16.mxu0 %v1269_v11 }
  0x30   : > { %1153 = vmatpush3.bf16.msra.mxu1 %v1284_v22 }
  0x31   : > { %1154 = vmatprep.subr.bf16.mxu1 %v1285_v23 }
  0x32   : > { %1123 = vmatpush3.bf16.msra.mxu0 %v1269_v11 }
  0x33   : > { %1172 = vmatprep.subr.bf16.mxu0 %v1286_v24 }
  0x34   : > { %1155 = vmatpush3.bf16.msra.mxu1 %v1285_v23  ;;  %v1292_v23 = vld [vmem:[%s1392_s23 + $0xb0] sm:$0xff]  }
  0x35   : > { %1125 = vmatmul.mubr.bf16.vlgmr.msra.gmra.mrb[0].mxu0 %v1271_v14  ;;  %1204 = vmatprep.subr.bf16.mxu1 %v1286_v24 }
  0x36   : > { %1128 = vmatprep.mubr.bf16.mxu0 %v1272_v15  ;;  %1173 = vmatpush3.bf16.msra.mxu0 %v1286_v24 }
  0x37   : > { %1174 = vmatprep.subr.bf16.mxu0 %v1287_v25 }
  0x3a   : > { %1175 = vmatpush3.bf16.msra.mxu0 %v1287_v25 }
  0x3b   : > { %1176 = vmatprep.subr.bf16.mxu0 %v1288_v26 }
  0x3d   : > { %1129 = vmatmul.mubr.bf16.gmra.mrb[4].mxu0 %v1273_v17 }
  0x3e   : > { %1132 = vmatprep.mubr.bf16.mxu0 %v1274_v18  ;;  %1177 = vmatpush3.bf16.msra.mxu0 %v1288_v26 }
  0x3f   : > { %1178 = vmatprep.subr.bf16.mxu0 %v1428_v27 }
  0x42   : > { %1179 = vmatpush3.bf16.msra.mxu0 %v1428_v27 }
  0x43   : > { %1180 = vmatprep.subr.bf16.mxu0 %v1432_v28 }
  0x45   : > { %1133 = vmatmul.mubr.bf16.gmra.mrb[8].mxu0 %v1275_v19 }
  0x46   : > { %1136 = vmatprep.mubr.bf16.mxu0 %v1276_v20  ;;  %1181 = vmatpush3.bf16.msra.mxu0 %v1432_v28 }
  0x47   : > { %1182 = vmatprep.subr.bf16.mxu0 %v1437_v29 }
  0x4a   : > { %1183 = vmatpush3.bf16.msra.mxu0 %v1437_v29 }
  0x4b   : > { %1184 = vmatprep.subr.bf16.mxu0 %v1292_v23 }
  0x4d   : > { %1137 = vmatmul.mubr.bf16.gmra.mrb[12].mxu0 %v1277_v21 }
  0x4e   : > { %1185 = vmatpush3.bf16.msra.mxu0 %v1292_v23 }
 0x108   : > { %v1126_v31 = vpop.f32.mrb[0].mxu0 }
 0x109   : > { %v412_v32 = vadd.f32 %v1126_v31, %v1449_v30  ;;  %v403_v33 = vpop.f32.mrb[1].mxu0 }
 0x10a   : > { %v404_v34 = vadd.f32 %v1449_v30, %v403_v33  ;;  %v1127_v35 = vpop.f32.mrb[2].mxu0 }
 0x10b   : > { %v415_v36 = vadd.f32 %v1127_v35, %v1449_v30  ;;  %v406_v37 = vpop.f32.mrb[3].mxu0  ;;  %v468_v39 = vmax.f32 %v412_v32, 0.0 }
 0x10c   : > { %v407_v38 = vadd.f32 %v1449_v30, %v406_v37  ;;  %v466_v41 = vmax.f32 %v404_v34, 0.0 }
 0x10d   : > { %v469_v40 = vmax.f32 %v415_v36, 0.0 }
 0x10e   : > { %v467_v42 = vmax.f32 %v407_v38, 0.0 }
 0x10f   : > { %v483_v43 = vpack.c.bf16 %v469_v40, %v468_v39 }
 0x110   : > { %v1130_v44 = vpop.f32.mrb[4].mxu0  ;;  %v482_v45 = vpack.c.bf16 %v467_v42, %v466_v41 }
 0x111   : > { %v428_v46 = vadd.f32 %v1130_v44, %v1449_v30  ;;  %v419_v47 = vpop.f32.mrb[5].mxu0 }
 0x112   : > { %v420_v48 = vadd.f32 %v1449_v30, %v419_v47  ;;  %v1131_v49 = vpop.f32.mrb[6].mxu0  ;;  %1156 = vmatprep.mubr.bf16.mxu1 %v482_v45 }
 0x113   : > { %v431_v50 = vadd.f32 %v1131_v49, %v1449_v30  ;;  %v422_v51 = vpop.f32.mrb[7].mxu0  ;;  %1157 = vmatmul.mubr.bf16.vlgmr.msra.gmra.mrb[0].mxu1 %v483_v43  ;;  %v472_v53 = vmax.f32 %v428_v46, 0.0 }
 0x114   : > { %v423_v52 = vadd.f32 %v1449_v30, %v422_v51  ;;  %1212 = vmatpush3.bf16.msra.mxu1 %v1286_v24  ;;  %v470_v55 = vmax.f32 %v420_v48, 0.0  ;;  %v1293_v24 = vld [vmem:[%s1392_s23 + $0xb8] sm:$0xff]  }
 0x115   : > { %v473_v54 = vmax.f32 %v431_v50, 0.0  ;;  %1205 = vmatprep.subr.bf16.mxu1 %v1287_v25  ;;  %1186 = vmatprep.subr.bf16.mxu0 %v1293_v24 }
 0x116   : > { %v471_v56 = vmax.f32 %v423_v52, 0.0  ;;  %1187 = vmatpush3.bf16.msra.mxu0 %v1293_v24 }
 0x117   : > { %v485_v57 = vpack.c.bf16 %v473_v54, %v472_v53 }
 0x118   : > { %v484_v58 = vpack.c.bf16 %v471_v56, %v470_v55  ;;  %v1134_v59 = vpop.f32.mrb[8].mxu0  ;;  %1213 = vmatpush3.bf16.msra.mxu1 %v1287_v25  ;;  %v1023_v25 = vld [vmem:[%s1446_s4 + $0x1] ss:$0 sm:$0xff] }
 0x119   : > { %v444_v60 = vadd.f32 %v1134_v59, %v1449_v30  ;;  %v435_v61 = vpop.f32.mrb[9].mxu0  ;;  %1206 = vmatprep.subr.bf16.mxu1 %v1288_v26 }
 0x11a   : > { %v436_v62 = vadd.f32 %v1449_v30, %v435_v61  ;;  %v1135_v63 = vpop.f32.mrb[10].mxu0  ;;  %1160 = vmatprep.mubr.bf16.mxu1 %v484_v58 }
 0x11b   : > { %v447_v0 = vadd.f32 %v1135_v63, %v1449_v30  ;;  %v438_v1 = vpop.f32.mrb[11].mxu0  ;;  %1161 = vmatmul.mubr.bf16.gmra.mrb[4].mxu1 %v485_v57  ;;  %v476_v3 = vmax.f32 %v444_v60, 0.0 }
 0x11c   : > { %v439_v2 = vadd.f32 %v1449_v30, %v438_v1  ;;  %1214 = vmatpush3.bf16.msra.mxu1 %v1288_v26  ;;  %v474_v5 = vmax.f32 %v436_v62, 0.0 }
 0x11d   : > { %v477_v4 = vmax.f32 %v447_v0, 0.0  ;;  %1207 = vmatprep.subr.bf16.mxu1 %v1428_v27 }
 0x11e   : > { %v475_v6 = vmax.f32 %v439_v2, 0.0 }
 0x11f   : > { %v487_v7 = vpack.c.bf16 %v477_v4, %v476_v3 }
 0x120   : > { %v486_v8 = vpack.c.bf16 %v475_v6, %v474_v5  ;;  %v1138_v9 = vpop.f32.mrb[12].mxu0  ;;  %1215 = vmatpush3.bf16.msra.mxu1 %v1428_v27 }
 0x121   : > { %v460_v10 = vadd.f32 %v1138_v9, %v1449_v30  ;;  %v451_v11 = vpop.f32.mrb[13].mxu0  ;;  %1208 = vmatprep.subr.bf16.mxu1 %v1432_v28 }
 0x122   : > { %v452_v12 = vadd.f32 %v1449_v30, %v451_v11  ;;  %v1139_v13 = vpop.f32.mrb[14].mxu0  ;;  %1164 = vmatprep.mubr.bf16.mxu1 %v486_v8 }
 0x123   : > { %v463_v14 = vadd.f32 %v1139_v13, %v1449_v30  ;;  %v454_v15 = vpop.f32.mrb[15].mxu0  ;;  %1165 = vmatmul.mubr.bf16.gmra.mrb[8].mxu1 %v487_v7  ;;  %v480_v17 = vmax.f32 %v460_v10, 0.0 }
 0x124   : > { %v455_v16 = vadd.f32 %v1449_v30, %v454_v15  ;;  %1216 = vmatpush3.bf16.msra.mxu1 %v1432_v28  ;;  %v478_v19 = vmax.f32 %v452_v12, 0.0 }
 0x125   : > { %v481_v18 = vmax.f32 %v463_v14, 0.0  ;;  %1209 = vmatprep.subr.bf16.mxu1 %v1437_v29 }
 0x126   : > { %v479_v20 = vmax.f32 %v455_v16, 0.0 }
 0x127   : > { %v489_v21 = vpack.c.bf16 %v481_v18, %v480_v17  ;;  %v1049_v18 = vld [vmem:[%s1446_s4 + $0x2] ss:$0 sm:$0xff] }
 0x128   : > { %v488_v22 = vpack.c.bf16 %v479_v20, %v478_v19  ;;  %1217 = vmatpush3.bf16.msra.mxu1 %v1437_v29 }
 0x129   : > { %1210 = vmatprep.subr.bf16.mxu1 %v1292_v23 }
 0x12a   : > { %1168 = vmatprep.mubr.bf16.mxu1 %v488_v22 }
 0x12b   : > { %1169 = vmatmul.mubr.bf16.gmra.mrb[12].mxu1 %v489_v21 }
 0x12c   : > { %1218 = vmatpush3.bf16.msra.mxu1 %v1292_v23 }
 0x12d   : > { %1211 = vmatprep.subr.bf16.mxu1 %v1293_v24 }
 0x130   : > { %1219 = vmatpush3.bf16.msra.mxu1 %v1293_v24 }
 0x1e6   : > { %v1158_v26 = vpop.f32.mrb[0].mxu1 }
 0x1e7   : > { %v606_v27 = vadd.f32 %v1158_v26, %v1023_v25  ;;  %v597_v28 = vpop.f32.mrb[1].mxu1 }
 0x1e8   : > { %v598_v30 = vadd.f32 %v1023_v25, %v597_v28  ;;  %v1159_v31 = vpop.f32.mrb[2].mxu1 }
 0x1e9   : > { %v609_v32 = vadd.f32 %v1159_v31, %v1023_v25  ;;  %v600_v29 = vpop.f32.mrb[3].mxu1  ;;  %v662_v34 = vmax.f32 %v606_v27, 0.0 }
 0x1ea   : > { %v601_v33 = vadd.f32 %v1023_v25, %v600_v29  ;;  %v660_v36 = vmax.f32 %v598_v30, 0.0 }
 0x1eb   : > { %v663_v35 = vmax.f32 %v609_v32, 0.0 }
 0x1ec   : > { %v661_v37 = vmax.f32 %v601_v33, 0.0 }
 0x1ed   : > { %v677_v38 = vpack.c.bf16 %v663_v35, %v662_v34 }
 0x1ee   : > { %v676_v39 = vpack.c.bf16 %v661_v37, %v660_v36  ;;  %v1162_v40 = vpop.f32.mrb[4].mxu1 }
 0x1ef   : > { %v622_v41 = vadd.f32 %v1162_v40, %v1023_v25  ;;  %v613_v42 = vpop.f32.mrb[5].mxu1 }
 0x1f0   : > { %v614_v43 = vadd.f32 %v1023_v25, %v613_v42  ;;  %v1163_v44 = vpop.f32.mrb[6].mxu1  ;;  %1188 = vmatprep.mubr.bf16.mxu0 %v676_v39 }
 0x1f1   : > { %v625_v45 = vadd.f32 %v1163_v44, %v1023_v25  ;;  %v616_v46 = vpop.f32.mrb[7].mxu1  ;;  %1189 = vmatmul.mubr.bf16.vlgmr.msra.gmra.mrb[16].mxu0 %v677_v38  ;;  %v666_v48 = vmax.f32 %v622_v41, 0.0 }
 0x1f2   : > { %v617_v47 = vadd.f32 %v1023_v25, %v616_v46  ;;  %v664_v50 = vmax.f32 %v614_v43, 0.0 }
 0x1f3   : > { %v667_v49 = vmax.f32 %v625_v45, 0.0 }
 0x1f4   : > { %v665_v51 = vmax.f32 %v617_v47, 0.0 }
 0x1f5   : > { %v679_v52 = vpack.c.bf16 %v667_v49, %v666_v48 }
 0x1f6   : > { %v678_v53 = vpack.c.bf16 %v665_v51, %v664_v50  ;;  %v1166_v54 = vpop.f32.mrb[8].mxu1 }
 0x1f7   : > { %v638_v55 = vadd.f32 %v1166_v54, %v1023_v25  ;;  %v629_v56 = vpop.f32.mrb[9].mxu1 }
 0x1f8   : > { %v630_v57 = vadd.f32 %v1023_v25, %v629_v56  ;;  %v1167_v58 = vpop.f32.mrb[10].mxu1  ;;  %1192 = vmatprep.mubr.bf16.mxu0 %v678_v53 }
 0x1f9   : > { %v641_v59 = vadd.f32 %v1167_v58, %v1023_v25  ;;  %v632_v60 = vpop.f32.mrb[11].mxu1  ;;  %1193 = vmatmul.mubr.bf16.gmra.mrb[20].mxu0 %v679_v52  ;;  %v670_v62 = vmax.f32 %v638_v55, 0.0 }
 0x1fa   : > { %v633_v61 = vadd.f32 %v1023_v25, %v632_v60  ;;  %v668_v0 = vmax.f32 %v630_v57, 0.0 }
 0x1fb   : > { %v671_v63 = vmax.f32 %v641_v59, 0.0 }
 0x1fc   : > { %v669_v1 = vmax.f32 %v633_v61, 0.0 }
 0x1fd   : > { %v681_v2 = vpack.c.bf16 %v671_v63, %v670_v62 }
 0x1fe   : > { %v680_v3 = vpack.c.bf16 %v669_v1, %v668_v0  ;;  %v1170_v4 = vpop.f32.mrb[12].mxu1 }
 0x1ff   : > { %v654_v5 = vadd.f32 %v1170_v4, %v1023_v25  ;;  %v645_v6 = vpop.f32.mrb[13].mxu1 }
 0x200   : > { %v646_v7 = vadd.f32 %v1023_v25, %v645_v6  ;;  %v1171_v8 = vpop.f32.mrb[14].mxu1  ;;  %1196 = vmatprep.mubr.bf16.mxu1 %v680_v3 }
 0x201   : > { %v657_v9 = vadd.f32 %v1171_v8, %v1023_v25  ;;  %v648_v10 = vpop.f32.mrb[15].mxu1  ;;  %1197 = vmatmul.mubr.bf16.vlgmr.msra.gmra.mrb[16].mxu1 %v681_v2  ;;  %v674_v12 = vmax.f32 %v654_v5, 0.0 }
 0x202   : > { %v649_v11 = vadd.f32 %v1023_v25, %v648_v10  ;;  %v672_v14 = vmax.f32 %v646_v7, 0.0 }
 0x203   : > { %v675_v13 = vmax.f32 %v657_v9, 0.0 }
 0x204   : > { %v673_v15 = vmax.f32 %v649_v11, 0.0 }
 0x205   : > { %v683_v16 = vpack.c.bf16 %v675_v13, %v674_v12 }
 0x206   : > { %v682_v17 = vpack.c.bf16 %v673_v15, %v672_v14 }
 0x208   : > { %1200 = vmatprep.mubr.bf16.mxu1 %v682_v17 }
 0x209   : > { %1201 = vmatmul.mubr.bf16.gmra.mrb[20].mxu1 %v683_v16 }
 0x2c4   : > { %v1190_v19 = vpop.f32.mrb[16].mxu0 }
 0x2c5   : > { %v800_v20 = vadd.f32 %v1190_v19, %v1049_v18  ;;  %v791_v21 = vpop.f32.mrb[17].mxu0 }
 0x2c6   : > { %v792_v22 = vadd.f32 %v1049_v18, %v791_v21  ;;  %v1191_v23 = vpop.f32.mrb[18].mxu0 }
 0x2c7   : > { %856 = vst [vmem:[%s1482_s10 + $0x10] sm:$0xff] %v800_v20  ;;  %v803_v24 = vadd.f32 %v1191_v23, %v1049_v18  ;;  %v794_v25 = vpop.f32.mrb[19].mxu0 }
 0x2c8   : > { %854 = vst [vmem:[%s1482_s10] sm:$0xff] %v792_v22  ;;  %v795_v26 = vadd.f32 %v1049_v18, %v794_v25 }
 0x2c9   : > { %857 = vst [vmem:[%s1482_s10 + $0x18] sm:$0xff] %v803_v24 }
 0x2ca   : > { %855 = vst [vmem:[%s1482_s10 + $0x8] sm:$0xff] %v795_v26 }
 0x2cc   : > { %v1194_v27 = vpop.f32.mrb[20].mxu0 }
 0x2cd   : > { %v816_v28 = vadd.f32 %v1194_v27, %v1049_v18  ;;  %v807_v30 = vpop.f32.mrb[21].mxu0 }
 0x2ce   : > { %v808_v31 = vadd.f32 %v1049_v18, %v807_v30  ;;  %v1195_v32 = vpop.f32.mrb[22].mxu0 }
 0x2cf   : > { %860 = vst [vmem:[%s1482_s10 + $0x30] sm:$0xff] %v816_v28  ;;  %v819_v29 = vadd.f32 %v1195_v32, %v1049_v18  ;;  %v810_v33 = vpop.f32.mrb[23].mxu0 }
 0x2d0   : > { %858 = vst [vmem:[%s1482_s10 + $0x20] sm:$0xff] %v808_v31  ;;  %v811_v34 = vadd.f32 %v1049_v18, %v810_v33 }
 0x2d1   : > { %861 = vst [vmem:[%s1482_s10 + $0x38] sm:$0xff] %v819_v29 }
 0x2d2   : > { %859 = vst [vmem:[%s1482_s10 + $0x28] sm:$0xff] %v811_v34 }
 0x2d4   : > { %v1198_v35 = vpop.f32.mrb[16].mxu1 }
 0x2d5   : > { %v832_v36 = vadd.f32 %v1198_v35, %v1049_v18  ;;  %v823_v37 = vpop.f32.mrb[17].mxu1 }
 0x2d6   : > { %v824_v38 = vadd.f32 %v1049_v18, %v823_v37  ;;  %v1199_v39 = vpop.f32.mrb[18].mxu1 }
 0x2d7   : > { %864 = vst [vmem:[%s1482_s10 + $0x50] sm:$0xff] %v832_v36  ;;  %v835_v40 = vadd.f32 %v1199_v39, %v1049_v18  ;;  %v826_v41 = vpop.f32.mrb[19].mxu1 }
 0x2d8   : > { %862 = vst [vmem:[%s1482_s10 + $0x40] sm:$0xff] %v824_v38  ;;  %v827_v42 = vadd.f32 %v1049_v18, %v826_v41 }
 0x2d9   : > { %865 = vst [vmem:[%s1482_s10 + $0x58] sm:$0xff] %v835_v40 }
 0x2da   : > { %863 = vst [vmem:[%s1482_s10 + $0x48] sm:$0xff] %v827_v42 }
 0x2dc   : > { %v1202_v43 = vpop.f32.mrb[20].mxu1 }
 0x2dd   : > { %v848_v44 = vadd.f32 %v1202_v43, %v1049_v18  ;;  %v839_v45 = vpop.f32.mrb[21].mxu1 }
 0x2de   : > { %v840_v46 = vadd.f32 %v1049_v18, %v839_v45  ;;  %v1203_v47 = vpop.f32.mrb[22].mxu1 }
 0x2df   : > { %868 = vst [vmem:[%s1482_s10 + $0x70] sm:$0xff] %v848_v44  ;;  %v851_v48 = vadd.f32 %v1203_v47, %v1049_v18  ;;  %v842_v49 = vpop.f32.mrb[23].mxu1 }
 0x2e0   : > { %866 = vst [vmem:[%s1482_s10 + $0x60] sm:$0xff] %v840_v46  ;;  %v843_v50 = vadd.f32 %v1049_v18, %v842_v49 }
 0x2e1   : > { %869 = vst [vmem:[%s1482_s10 + $0x78] sm:$0xff] %v851_v48 }
 0x2e2   : > { %867 = vst [vmem:[%s1482_s10 + $0x68] sm:$0xff] %v843_v50 }
 0x2e3 PF: > { %s13_s16 = sadd.s32 1, %s1332_s16   ;;  %s1519_s12 = smov %s1324_s14 }
 0x2e4   : > { %p10_p7 = scmp.ge.s32.totalorder %s13_s16, 6   ;;  %s1520_s13 = smov %s1328_s15 }
 0x2e5   : > { %s1521_s14 = smov %s1524_s17  ;;  %s1522_s15 = smov %s1528_s18 }
 0x2e6   :  { %12 = sbr.rel (!%p10_p7) target bundleno = 3 (0x3), region = 72 }

</bundles_post_ra>
